<compile_context>
chip_gen: v7x
topology: tpu7x:2x2x1
jax: 0.10.0
libtpu: 0.0.40
codegen_flags: <defaults>
</compile_context>

<pallas_src>
import jax
import jax.numpy as jnp
import numpy as np
from jax import lax
from jax.experimental import pallas as pl
from jax.experimental.pallas import tpu as pltpu


def lora_kernel(x_ref, w_ref, a_ref, b_ref, bias_ref, o_ref, acc_ref, xb_ref):
    """One (i, j, k) grid step of  out = x @ W.T + (x @ B.T) @ A.T + bias."""
    k = pl.program_id(2)

    @pl.when(k == 0)
    def _init():
        acc_ref[...] = jnp.zeros_like(acc_ref)
        xb_ref[...] = jnp.zeros_like(xb_ref)

    x = x_ref[...]  # (tm, tk), native dtype -> MXU

    # Main term: (tm, tk) . (tn, tk) contracted over the `in` axis -> (tm, tn).
    # dot_general with transposed-RHS dimension numbers: no materialized .T.
    acc_ref[...] += lax.dot_general(
        x, w_ref[...],
        dimension_numbers=(((1,), (1,)), ((), ())),
        preferred_element_type=jnp.float32)

    # Low-rank projection: (tm, tk) . (rank, tk) -> (tm, rank), accumulated over K.
    xb_ref[...] += lax.dot_general(
        x, b_ref[...],
        dimension_numbers=(((1,), (1,)), ((), ())),
        preferred_element_type=jnp.float32)

    @pl.when(k == pl.num_programs(2) - 1)
    def _epilogue():
        # Rank contraction (tiny): (tm, rank) . (tn, rank) -> (tm, tn).
        low = lax.dot_general(
            xb_ref[...], a_ref[...].astype(jnp.float32),
            dimension_numbers=(((1,), (1,)), ((), ())),
            preferred_element_type=jnp.float32)
        out = acc_ref[...] + low + bias_ref[...].astype(jnp.float32)
        o_ref[...] = out.astype(o_ref.dtype)


def _pick_tile(dim, candidates):
    """Largest candidate that evenly divides `dim`; else the full extent
    (which always satisfies the (8,128) BlockSpec rule as block == array dim)."""
    for c in candidates:
        if dim % c == 0:
            return c
    return dim


def lora_forward(x, W, A, B, bias, *, tm_target=256, tn_target=256, tk_target=512):
    """x: (..., in_features) -> (..., out_features)."""
    *lead, in_f = x.shape
    out_f, in_f_w = W.shape
    rank = A.shape[1]
    assert in_f == in_f_w
    assert A.shape == (out_f, rank) and B.shape == (rank, in_f)
    assert bias.shape == (out_f,)

    M = int(np.prod(lead)) if lead else 1
    x2 = x.reshape(M, in_f)
    bias2 = bias.reshape(1, out_f)

    # Tile sizes: 256-multiples on N/K (v6e/v7x 2x256x256 MXU; also 128-aligned for
    # v5e's 4x128x128). Small/indivisible dims fall back to the full extent.
    tm = _pick_tile(M, (tm_target, 128, 64, 32, 16, 8))
    tn = _pick_tile(out_f, (tn_target, 128))
    tk = _pick_tile(in_f, (tk_target, 256, 128))

    grid = (M // tm, out_f // tn, in_f // tk)

    flops = 2 * M * in_f * out_f + 2 * M * in_f * rank + 2 * M * rank * out_f
    bytes_accessed = (x2.size * x2.dtype.itemsize
                      + W.size * W.dtype.itemsize
                      + A.size * A.dtype.itemsize
                      + B.size * B.dtype.itemsize
                      + bias.size * bias.dtype.itemsize
                      + M * out_f * x.dtype.itemsize)

    out = pl.pallas_call(
        lora_kernel,
        out_shape=jax.ShapeDtypeStruct((M, out_f), x.dtype),
        grid_spec=pltpu.PrefetchScalarGridSpec(
            num_scalar_prefetch=0,
            grid=grid,
            in_specs=[
                pl.BlockSpec((tm, tk), lambda i, j, k: (i, k)),     # x tile
                pl.BlockSpec((tn, tk), lambda i, j, k: (j, k)),     # W tile
                pl.BlockSpec((tn, rank), lambda i, j, k: (j, 0)),   # LoRA_A tile
                pl.BlockSpec((rank, tk), lambda i, j, k: (0, k)),   # LoRA_B tile
                pl.BlockSpec((1, tn), lambda i, j, k: (0, j)),      # bias tile
            ],
            out_specs=pl.BlockSpec((tm, tn), lambda i, j, k: (i, j)),
            scratch_shapes=[
                pltpu.VMEM((tm, tn), jnp.float32),    # main f32 accumulator
                pltpu.VMEM((tm, rank), jnp.float32),  # (x @ B.T) accumulator
            ]),
        compiler_params=pltpu.CompilerParams(
            dimension_semantics=("parallel", "parallel", "arbitrary"),
            # Leave headroom for double-buffering; well below v7x's 64 MiB VMEM.
            vmem_limit_bytes=48 << 20),
        cost_estimate=pl.CostEstimate(
            flops=flops, transcendentals=0, bytes_accessed=bytes_accessed),
    )(x2, W, A, B, bias2)

    return out.reshape(*lead, out_f)


if __name__ == "__main__":
    # Small, deterministic problem: batch=2, seq=8, hidden(in)=32, out=32, rank=4.
    batch, seq, in_f, out_f, rank = 2, 8, 32, 32, 4

    key = jax.random.PRNGKey(0)
    kx, kw, kb, ka, kbb = jax.random.split(key, 5)

    x = jax.random.normal(kx, (batch, seq, in_f), dtype=jnp.float32)
    # Parameters of the wrapped nn.Linear (deterministic synthetic init).
    W = jax.random.normal(kw, (out_f, in_f), dtype=jnp.float32) * 0.1
    bias = jax.random.normal(kb, (out_f,), dtype=jnp.float32) * 0.1
    # LoRA params for the selected module (selected_module = 0).
    A = jax.random.normal(ka, (out_f, rank), dtype=jnp.float32) * 0.1
    B = jax.random.normal(kbb, (rank, in_f), dtype=jnp.float32) * 0.1

    out = lora_forward(x, W, A, B, bias)
    out = jax.block_until_ready(out)

    # Reference check against the original (un-reassociated) PyTorch formula.
    ref = x @ (W + A @ B).T + bias
    np.testing.assert_allclose(np.asarray(out), np.asarray(ref),
                               rtol=1e-4, atol=1e-5)

    print("KERNEL_OK")
</pallas_src>

<mosaic_0001>
module attributes {stable_mosaic.version = 11 : i64} {
  func.func @lora_kernel(%arg0: i32, %arg1: i32, %arg2: i32, %arg3: memref<16x32xf32, #tpu.memory_space<vmem>>, %arg4: memref<32x32xf32, #tpu.memory_space<vmem>>, %arg5: memref<32x4xf32, #tpu.memory_space<vmem>>, %arg6: memref<4x32xf32, #tpu.memory_space<vmem>>, %arg7: memref<1x32xf32, #tpu.memory_space<vmem>>, %arg8: memref<16x32xf32, #tpu.memory_space<vmem>>, %arg9: memref<16x32xf32, #tpu.memory_space<vmem>>, %arg10: memref<16x4xf32, #tpu.memory_space<vmem>>) attributes {dimension_semantics = [#tpu.dimension_semantics<parallel>, #tpu.dimension_semantics<parallel>, #tpu.dimension_semantics<arbitrary>], iteration_bounds = array<i64: 1, 1, 1>, scalar_prefetch = 0 : i64, scratch_operands = 2 : i64, tpu.core_type = #tpu.core_type<tc>, window_params = [{transform_indices = @transform_0, window_bounds = array<i64: 16, 32>}, {transform_indices = @transform_1, window_bounds = array<i64: 32, 32>}, {transform_indices = @transform_2, window_bounds = array<i64: 32, 4>}, {transform_indices = @transform_3, window_bounds = array<i64: 4, 32>}, {transform_indices = @transform_4, window_bounds = array<i64: 1, 32>}, {transform_indices = @transform_5, window_bounds = array<i64: 16, 32>}]} {
    %c0_i32 = arith.constant 0 : i32
    %0 = arith.cmpi eq, %arg2, %c0_i32 : i32
    %1 = arith.extui %0 : i1 to i32
    %c0_i32_0 = arith.constant 0 : i32
    %2 = arith.cmpi ne, %1, %c0_i32_0 : i32
    scf.if %2 {
      %cst_17 = arith.constant 0.000000e+00 : f32
      %17 = vector.broadcast %cst_17 : f32 to vector<16x32xf32>
      %c0_18 = arith.constant 0 : index
      %c0_19 = arith.constant 0 : index
      %18 = vector.load %arg9[%c0_18, %c0_19] : memref<16x32xf32, #tpu.memory_space<vmem>>, vector<16x32xf32>
      tpu.vector_store %arg9[%c0_18, %c0_19], %17 {strides = array<i32>} : memref<16x32xf32, #tpu.memory_space<vmem>>, vector<16x32xf32>,
      %cst_20 = arith.constant 0.000000e+00 : f32
      %19 = vector.broadcast %cst_20 : f32 to vector<16x4xf32>
      %c0_21 = arith.constant 0 : index
      %c0_22 = arith.constant 0 : index
      %20 = vector.load %arg10[%c0_21, %c0_22] : memref<16x4xf32, #tpu.memory_space<vmem>>, vector<16x4xf32>
      tpu.vector_store %arg10[%c0_21, %c0_22], %19 {strides = array<i32>} : memref<16x4xf32, #tpu.memory_space<vmem>>, vector<16x4xf32>,
    } else {
    }
    %c0 = arith.constant 0 : index
    %c0_1 = arith.constant 0 : index
    %3 = vector.load %arg3[%c0, %c0_1] : memref<16x32xf32, #tpu.memory_space<vmem>>, vector<16x32xf32>
    %c0_2 = arith.constant 0 : index
    %c0_3 = arith.constant 0 : index
    %4 = vector.load %arg9[%c0_2, %c0_3] : memref<16x32xf32, #tpu.memory_space<vmem>>, vector<16x32xf32>
    %c0_4 = arith.constant 0 : index
    %c0_5 = arith.constant 0 : index
    %5 = vector.load %arg4[%c0_4, %c0_5] : memref<32x32xf32, #tpu.memory_space<vmem>>, vector<32x32xf32>
    %cst = arith.constant dense<0.000000e+00> : vector<16x32xf32>
    %6 = tpu.matmul %3, %5, %cst {dimension_numbers = #tpu.dot_dimension_numbers<[1], [1], [0], [0], [0, 0, 1, 0], [], []>} : vector<16x32xf32>, vector<32x32xf32>, vector<16x32xf32> -> vector<16x32xf32>
    %7 = arith.addf %4, %6 : vector<16x32xf32>
    %c0_6 = arith.constant 0 : index
    %c0_7 = arith.constant 0 : index
    %8 = vector.load %arg9[%c0_6, %c0_7] : memref<16x32xf32, #tpu.memory_space<vmem>>, vector<16x32xf32>
    tpu.vector_store %arg9[%c0_6, %c0_7], %7 {strides = array<i32>} : memref<16x32xf32, #tpu.memory_space<vmem>>, vector<16x32xf32>,
    %c0_8 = arith.constant 0 : index
    %c0_9 = arith.constant 0 : index
    %9 = vector.load %arg10[%c0_8, %c0_9] : memref<16x4xf32, #tpu.memory_space<vmem>>, vector<16x4xf32>
    %c0_10 = arith.constant 0 : index
    %c0_11 = arith.constant 0 : index
    %10 = vector.load %arg6[%c0_10, %c0_11] : memref<4x32xf32, #tpu.memory_space<vmem>>, vector<4x32xf32>
    %cst_12 = arith.constant dense<0.000000e+00> : vector<16x4xf32>
    %11 = tpu.matmul %3, %10, %cst_12 {dimension_numbers = #tpu.dot_dimension_numbers<[1], [1], [0], [0], [0, 0, 1, 0], [], []>} : vector<16x32xf32>, vector<4x32xf32>, vector<16x4xf32> -> vector<16x4xf32>
    %12 = arith.addf %9, %11 : vector<16x4xf32>
    %c0_13 = arith.constant 0 : index
    %c0_14 = arith.constant 0 : index
    %13 = vector.load %arg10[%c0_13, %c0_14] : memref<16x4xf32, #tpu.memory_space<vmem>>, vector<16x4xf32>
    tpu.vector_store %arg10[%c0_13, %c0_14], %12 {strides = array<i32>} : memref<16x4xf32, #tpu.memory_space<vmem>>, vector<16x4xf32>,
    %c0_i32_15 = arith.constant 0 : i32
    %14 = arith.cmpi eq, %arg2, %c0_i32_15 : i32
    %15 = arith.extui %14 : i1 to i32
    %c0_i32_16 = arith.constant 0 : i32
    %16 = arith.cmpi ne, %15, %c0_i32_16 : i32
    scf.if %16 {
      %c0_17 = arith.constant 0 : index
      %c0_18 = arith.constant 0 : index
      %17 = vector.load %arg10[%c0_17, %c0_18] : memref<16x4xf32, #tpu.memory_space<vmem>>, vector<16x4xf32>
      %c0_19 = arith.constant 0 : index
      %c0_20 = arith.constant 0 : index
      %18 = vector.load %arg5[%c0_19, %c0_20] : memref<32x4xf32, #tpu.memory_space<vmem>>, vector<32x4xf32>
      %cst_21 = arith.constant dense<0.000000e+00> : vector<16x32xf32>
      %19 = tpu.matmul %17, %18, %cst_21 {dimension_numbers = #tpu.dot_dimension_numbers<[1], [1], [0], [0], [0, 0, 1, 0], [], []>} : vector<16x4xf32>, vector<32x4xf32>, vector<16x32xf32> -> vector<16x32xf32>
      %c0_22 = arith.constant 0 : index
      %c0_23 = arith.constant 0 : index
      %20 = vector.load %arg9[%c0_22, %c0_23] : memref<16x32xf32, #tpu.memory_space<vmem>>, vector<16x32xf32>
      %21 = arith.addf %20, %19 : vector<16x32xf32>
      %c0_24 = arith.constant 0 : index
      %c0_25 = arith.constant 0 : index
      %22 = vector.load %arg7[%c0_24, %c0_25] : memref<1x32xf32, #tpu.memory_space<vmem>>, vector<1x32xf32>
      %23 = vector.broadcast %22 : vector<1x32xf32> to vector<16x32xf32>
      %24 = arith.addf %21, %23 : vector<16x32xf32>
      %c0_26 = arith.constant 0 : index
      %c0_27 = arith.constant 0 : index
      %25 = vector.load %arg8[%c0_26, %c0_27] : memref<16x32xf32, #tpu.memory_space<vmem>>, vector<16x32xf32>
      tpu.vector_store %arg8[%c0_26, %c0_27], %24 {strides = array<i32>} : memref<16x32xf32, #tpu.memory_space<vmem>>, vector<16x32xf32>,
    } else {
    }
    return
  }
  func.func @transform_0(%arg0: i32, %arg1: i32, %arg2: i32) -> (i32, i32) {
    %c0_i32 = arith.constant 0 : i32
    return %arg0, %arg2 : i32, i32
  }
  func.func @transform_1(%arg0: i32, %arg1: i32, %arg2: i32) -> (i32, i32) {
    %c0_i32 = arith.constant 0 : i32
    return %arg1, %arg2 : i32, i32
  }
  func.func @transform_2(%arg0: i32, %arg1: i32, %arg2: i32) -> (i32, i32) {
    %c0_i32 = arith.constant 0 : i32
    %c0_i32_0 = arith.constant 0 : i32
    return %arg1, %c0_i32 : i32, i32
  }
  func.func @transform_3(%arg0: i32, %arg1: i32, %arg2: i32) -> (i32, i32) {
    %c0_i32 = arith.constant 0 : i32
    %c0_i32_0 = arith.constant 0 : i32
    return %c0_i32, %arg2 : i32, i32
  }
  func.func @transform_4(%arg0: i32, %arg1: i32, %arg2: i32) -> (i32, i32) {
    %c0_i32 = arith.constant 0 : i32
    %c0_i32_0 = arith.constant 0 : i32
    return %c0_i32, %arg1 : i32, i32
  }
  func.func @transform_5(%arg0: i32, %arg1: i32, %arg2: i32) -> (i32, i32) {
    %c0_i32 = arith.constant 0 : i32
    return %arg0, %arg1 : i32, i32
  }
}

</mosaic_0001>

<bundles_post_ra>
// kernel: tpu_custom_call.1
= control target key start
LH: loop header
LB: loop body
LE: loop exit
PB: predicated region body
PF: predicated region fallthrough
CT: control target
= control target key end

     0   :  { %10 = vsyncpa [#allocation5], 0  ;;  %s635_s0 = inlined_call_operand.hbm [shape: f32[16,32], index: 0, kind: input, shape index: {}]   ;;  %s636_s1 = inlined_call_operand.vmem [shape: f32[32,32], index: 1, kind: input, shape index: {}]   ;;  %s637_s2 = inlined_call_operand.vmem [shape: f32[32,4], index: 2, kind: input, shape index: {}]   ;;  %s638_s3 = inlined_call_operand.vmem [shape: f32[4,32], index: 3, kind: input, shape index: {}]   ;;  %s639_s4 = inlined_call_operand.vmem [shape: f32[1,32], index: 4, kind: input, shape index: {}]   ;;  %s640_s5 = inlined_call_operand.hbm [shape: f32[16,32], index: 5, kind: output, shape index: {}]  }
   0x1   :  { %11 = vsyncpa [#allocation6], 0  ;;  %s506_s18 = smov [#allocation4]   ;;  %s458_s22 = scalar_lea.hbm %s635_s0, 256 }
   0x2   :  { %s17_s19 = sshll.u32 %s506_s18, 4  ;;  %p459_p0 = scmp.ne.s32.totalorder %s635_s0, %s458_s22  ;;  %s18_s19 = int_to_ptr.vmem [resolvable:$true] %s17_s19 }
   0x3   :  { %p462_p1 = scmp.lt.u32.totalorder %s458_s22, %s635_s0 }
   0x5   :  { %p464_p2 = pnand %p462_p1, %p459_p0 }
   0x7   :  { %467 = shalt.err (!%p464_p2)
}
   0x8   :  { %s468_s27 = scalar_lea.vmem %s18_s19, 256  ;;  %p473_p4 = scmp.lt.s32.totalorder %s18_s19, %s18_s19 }
   0x9   :  { %p469_p3 = scmp.ne.s32.totalorder %s18_s19, %s468_s27  ;;  %p474_p5 = scmp.lt.s32.totalorder %s468_s27, %s468_s27 }
   0xb   :  { %p475_p6 = por %p474_p5, %p473_p4 }
   0xd   :  { %p476_p7 = pnand %p475_p6, %p469_p3 }
   0xf   :  { %479 = shalt.err (!%p476_p7)
}
  0x10   :  { %s507_s28 = smov 128   ;;  %s508_s29 = smov 8  }
  0x11   :  { %23 = dma.hbm_to_vmem [thread:$0]  %s635_s0, 256, %s18_s19, [#allocation5], %s507_s28, %s507_s28, %s508_s29  }
  0x12   :  { %502 = dma.done.wait [#allocation5], 256  }
  0x13   :  { %503 = vsyncadd [#allocation5], 4294967040  ;;  %vm39_vm0 = vcmask 261120   ;;  %vm42_vm1 = vcmask 31744   ;;  %v509_v0 = vmov 0.0   ;;  %v45_v3 = vld [vmem:[#allocation4] sm:$0xff] }
  0x14   :  { %44 = vst.msk [vmem:[#allocation3 + $0x8] sm:$0xff] %vm42_vm1, %v509_v0  ;;  %43 = vst.msk [vmem:[#allocation3] sm:$0xff] %vm42_vm1, %v509_v0  ;;  %v153_v2 = vld [vmem:[%s638_s3] sm:$0xf]  ;;  %v46_v4 = vld [vmem:[#allocation4 + $0x8] sm:$0xff]  ;;  %415 = vmatprep.mubr.msk.f32.mxu1 %vm39_vm0, %v45_v3  ;;  %410 = vmatprep.mubr.msk.f32.mxu0 %vm39_vm0, %v45_v3  ;;  %s510_s23 = smov [#allocation7]  }
  0x15   :  { %40 = vst.msk [vmem:[#allocation2] sm:$0xff] %vm39_vm0, %v509_v0  ;;  %41 = vst.msk [vmem:[#allocation2 + $0x8] sm:$0xff] %vm39_vm0, %v509_v0  ;;  %413 = vmatprep.subr.msk.mxu1 %vm39_vm0, %v153_v2  ;;  %v49_v5 = vld [vmem:[%s636_s1] sm:$0xff]  ;;  %v50_v6 = vld [vmem:[%s636_s1 + $0x8] sm:$0xff]  ;;  %s359_s24 = sshll.u32 %s510_s23, 4  ;;  %s360_s24 = int_to_ptr.vmem [resolvable:$true] %s359_s24 }
  0x16   :  { %vm562_vm2 = vmpackc.low %vm39_vm0, %vm39_vm0  ;;  %v51_v7 = vld [vmem:[%s636_s1 + $0x10] sm:$0xff]  ;;  %414 = vmatpush3.xpose.msk.msra.mxu1 %vm39_vm0, %v153_v2  ;;  %v429_v8 = vpack.c.bf16 %v50_v6, %v49_v5  ;;  %v52_v9 = vld [vmem:[%s636_s1 + $0x18] sm:$0xff]  ;;  %s480_s25 = scalar_lea.vmem %s360_s24, 256  ;;  %p485_p9 = scmp.lt.s32.totalorder %s360_s24, %s360_s24 }
  0x17   :  { %v242_v10 = vld [vmem:[%s637_s2] sm:$0xff]  ;;  %v243_v11 = vld [vmem:[%s637_s2 + $0x8] sm:$0xff]  ;;  %v435_v12 = vpack.c.bf16 %v52_v9, %v51_v7  ;;  %vm442_vm3 = vmpackc.low %vm42_vm1, %vm42_vm1  ;;  %p481_p8 = scmp.ne.s32.totalorder %s360_s24, %s480_s25  ;;  %p486_p10 = scmp.lt.s32.totalorder %s480_s25, %s480_s25 }
  0x18   :  { %v441_v13 = vpack.c.bf16 %v243_v11, %v242_v10  ;;  %431 = vmatprep.subr.msk.bf16.mxu0 %vm562_vm2, %v429_v8  ;;  %v244_v14 = vld [vmem:[%s637_s2 + $0x10] sm:$0xff]  ;;  %v245_v15 = vld [vmem:[%s637_s2 + $0x18] sm:$0xff]  ;;  %v386_v34 = vld [vmem:[%s639_s4] ss:$0 sm:$0xff] }
  0x19   :  { %416 = vmatmul.mubr.msk.f32.vlgmr.msra.gmra.mrb[0].mxu1 %vm39_vm0, %v46_v4  ;;  %434 = vmatpush3.bf16.xpose.msk.msra.mxu0 %vm562_vm2, %v429_v8  ;;  %v447_v16 = vpack.c.bf16 %v245_v15, %v244_v14  ;;  %p487_p11 = por %p486_p10, %p485_p9 }
  0x1a   :  { %437 = vmatprep.subr.msk.bf16.mxu0 %vm562_vm2, %v435_v12  ;;  %443 = vmatprep.subr.msk.bf16.mxu1 %vm442_vm3, %v441_v13 }
  0x1b   :  { %446 = vmatpush3.bf16.xpose.msk.msra.mxu1 %vm442_vm3, %v441_v13  ;;  %v152_v17 = vld [vmem:[#allocation3 + $0x8] sm:$0xff]  ;;  %v151_v18 = vld [vmem:[#allocation3] sm:$0xff]  ;;  %p488_p12 = pnand %p487_p11, %p481_p8 }
  0x1c   :  { %449 = vmatprep.subr.msk.bf16.mxu1 %vm442_vm3, %v447_v16  ;;  %v48_v25 = vld [vmem:[#allocation2 + $0x8] sm:$0xff]  ;;  %v47_v26 = vld [vmem:[#allocation2] sm:$0xff] }
  0x21   :  { %440 = vmatpush3.bf16.xpose.msk.msra.mxu0 %vm562_vm2, %v435_v12 }
  0x23   :  { %452 = vmatpush3.bf16.xpose.msk.msra.mxu1 %vm442_vm3, %v447_v16 }
  0x28   :  { %411 = vmatmul.mubr.msk.f32.vlgmr.msra.gmra.mrb[0].mxu0 %vm39_vm0, %v46_v4 }
  0xec   :  { %v417_v19 = vpop.f32.mrb[0].mxu1 }
  0xed   :  { %v233_v20 = vadd.f32 %v417_v19, %v152_v17  ;;  %v223_v21 = vpop.f32.mrb[1].mxu1 }
  0xee   :  { %v232_v22 = vadd.f32 %v223_v21, %v151_v18 }
  0xef   :  { %236 = vst.msk [vmem:[#allocation3 + $0x8] sm:$0xff] %vm42_vm1, %v233_v20 }
  0xf0   :  { %235 = vst.msk [vmem:[#allocation3] sm:$0xff] %vm42_vm1, %v232_v22 }
  0xf6   :  { %v241_v24 = vld [vmem:[#allocation3 + $0x8] sm:$0xff] }
  0xf7   :  { %v240_v23 = vld [vmem:[#allocation3] sm:$0xff] }
  0xf8   :  { %426 = vmatprep.mubr.msk.f32.mxu1 %vm42_vm1, %v240_v23 }
  0xf9   :  { %427 = vmatmul.mubr.msk.f32.vlgmr.msra.gmra.mrb[2].mxu1 %vm42_vm1, %v241_v24 }
  0xfb   :  { %v412_v27 = vpop.f32.mrb[0].mxu0 }
  0xfc   :  { %v148_v28 = vadd.f32 %v412_v27, %v48_v25  ;;  %v138_v29 = vpop.f32.mrb[1].mxu0 }
  0xfd   :  { %v147_v30 = vadd.f32 %v138_v29, %v47_v26 }
  0xfe   :  { %150 = vst.msk [vmem:[#allocation2 + $0x8] sm:$0xff] %vm39_vm0, %v148_v28 }
  0xff   :  { %149 = vst.msk [vmem:[#allocation2] sm:$0xff] %vm39_vm0, %v147_v30 }
 0x105   :  { %v340_v31 = vld [vmem:[#allocation2 + $0x8] sm:$0xff] }
 0x106   :  { %v339_v32 = vld [vmem:[#allocation2] sm:$0xff] }
 0x1cc   :  { %v428_v33 = vpop.f32.mrb[2].mxu1 }
 0x1cd   :  { %v342_v35 = vadd.f32 %v428_v33, %v340_v31  ;;  %v330_v36 = vpop.f32.mrb[3].mxu1 }
 0x1ce   :  { %v341_v37 = vadd.f32 %v339_v32, %v330_v36 }
 0x1cf   :  { %v351_v38 = vadd.f32 %v386_v34, %v342_v35 }
 0x1d0   :  { %v350_v39 = vadd.f32 %v386_v34, %v341_v37 }
 0x1d1   :  { %353 = vst.msk [vmem:[#allocation7 + $0x8] sm:$0xff] %vm39_vm0, %v351_v38 }
 0x1d2   :  { %352 = vst.msk [vmem:[#allocation7] sm:$0xff] %vm39_vm0, %v350_v39 }
 0x1d3   :  { %491 = shalt.err (!%p488_p12)
}
 0x1d4   :  { %s492_s27 = scalar_lea.hbm %s640_s5, 256 }
 0x1d5   :  { %p493_p13 = scmp.ne.s32.totalorder %s640_s5, %s492_s27  ;;  %p496_p0 = scmp.lt.u32.totalorder %s492_s27, %s640_s5 }
 0x1d7   :  { %p498_p1 = pnand %p496_p0, %p493_p13 }
 0x1d9   :  { %501 = shalt.err (!%p498_p1)
}
 0x1da   :  { %365 = dma.vmem_to_hbm [thread:$0]  %s360_s24, 256, %s640_s5, [#allocation6], %s507_s28, %s507_s28, %s508_s29  }
 0x1db   :  { %504 = dma.done.wait [#allocation6], 256  }
 0x1dc   :  { %505 = vsyncadd [#allocation6], 4294967040 }
 0x1dd   :  { %369 = vsyncpa [#allocation5], 1 }
 0x1de   :  { %370 = vsyncpa [#allocation6], 1 }

</bundles_post_ra>
